<compile_context>
chip_gen: v7x
topology: tpu7x:2x2x1
jax: 0.10.0
libtpu: 0.0.40
codegen_flags: <defaults>
</compile_context>

<pallas_src>
import math
import functools

import jax
import jax.numpy as jnp
import numpy as np
from jax.experimental import pallas as pl
from jax.experimental.pallas import tpu as pltpu

_LANES = 128
_SQRT1_2 = 1.0 / math.sqrt(2.0)


def _erf_approx(x):
    # Abramowitz & Stegun 7.1.26 rational erf approximation, |err| <= 1.5e-7.
    # Built only from exp / mul / add / div / where, so it is guaranteed to lower on
    # Mosaic while matching PyTorch's exact (erf-form) F.gelu to float32 precision.
    a1, a2, a3, a4, a5 = (0.254829592, -0.284496736, 1.421413741,
                          -1.453152027, 1.061405429)
    p = 0.3275911
    ax = jnp.abs(x)
    t = 1.0 / (1.0 + p * ax)
    poly = ((((a5 * t + a4) * t + a3) * t + a2) * t + a1) * t
    y = 1.0 - poly * jnp.exp(-(ax * ax))
    return jnp.where(x >= 0.0, y, -y)


def _gelu_exact(x):
    return 0.5 * x * (1.0 + _erf_approx(x * _SQRT1_2))


def _layer_norm(x, gamma, beta, eps=1e-5):
    mu = jnp.mean(x, axis=-1, keepdims=True)
    var = jnp.mean(jnp.square(x - mu), axis=-1, keepdims=True)
    return (x - mu) * jax.lax.rsqrt(var + eps) * gamma + beta


def _decoder_layer_kernel(B, S, D, H, D_FF,
                          x_ref, slab_ref, wqkv_ref, wo_ref, w1_ref, w2_ref,
                          o_ref):
    f32 = jnp.float32
    x = x_ref[...]                                     # (B*S, D) float32

    # ---- static slices of the packed parameter slab (one DMA for all small operands) ----
    ln1_g = slab_ref[0:1, :D]
    ln1_b = slab_ref[1:2, :D]
    bo    = slab_ref[2:3, :D]
    ln2_g = slab_ref[3:4, :D]
    ln2_b = slab_ref[4:5, :D]
    b2    = slab_ref[5:6, :D]
    bqkv  = slab_ref[6:7, :3 * D]
    b1    = slab_ref[7:8, :D_FF]
    bias  = slab_ref[8:8 + S, :S]                      # (S, S) additive -1e10 mask bias
    hmask = slab_ref[8 + S:8 + S + H, :D]              # (H, D) per-head 0/1 lane mask

    # ---------------- LayerNorm 1 ----------------
    h = _layer_norm(x, ln1_g, ln1_b)                   # (BS, D)

    # ------------- fused QKV projection (1/sqrt(dk) folded into Q columns) -------------
    qkv = jnp.dot(h, wqkv_ref[...], preferred_element_type=f32) + bqkv     # (BS, 3D)
    q3 = qkv[:, 0 * D:1 * D].reshape(B, S, D)
    k3 = qkv[:, 1 * D:2 * D].reshape(B, S, D)
    v3 = qkv[:, 2 * D:3 * D].reshape(B, S, D)

    # ---- heads via full-width lane masks: no dk-wide lane slices, no lane concats ----
    hm4 = hmask[:, None, None, :]                      # (H, 1, 1, D)
    qg = (q3[None] * hm4).reshape(H * B, S, D)         # group g = head*B + batch
    vg = (v3[None] * hm4).reshape(H * B, S, D)
    kg = jnp.concatenate([k3] * H, axis=0)             # (H*B, S, D), leading-axis only

    # Masked contraction over the full D equals the per-head dk contraction (mask is 0/1).
    scores = jnp.einsum('gqd,gkd->gqk', qg, kg, preferred_element_type=f32)   # (G, S, S)
    scores = scores + bias[None, :, :]

    m = jnp.max(scores, axis=-1, keepdims=True)
    p = jnp.exp(scores - m)
    denom = jnp.sum(p, axis=-1, keepdims=True)
    w = p * pl.reciprocal(denom, approx=True)          # EUP slot; ~1e-4 rel error

    ctxg = jnp.einsum('gqk,gkd->gqd', w, vg, preferred_element_type=f32)      # (G, S, D)
    # Each head's context is non-zero only in its own columns -> summing heads reassembles
    # the (B, S, D) context with plain VPU adds (replaces the old concat(axis=-1)).
    ctxg = ctxg.reshape(H, B, S, D)
    ctx = ctxg[0]
    for hh in range(1, H):
        ctx = ctx + ctxg[hh]
    ctx2 = ctx.reshape(B * S, D)

    # ------------- output projection -------------
    attn_out = jnp.dot(ctx2, wo_ref[...], preferred_element_type=f32) + bo    # (BS, D)
    residual = attn_out    # per the reference module: residual taken AFTER attention

    # ------------- LayerNorm 2 + position-wise feed-forward -------------
    h2 = _layer_norm(attn_out, ln2_g, ln2_b)
    f1 = jnp.dot(h2, w1_ref[...], preferred_element_type=f32) + b1
    f1 = _gelu_exact(f1)
    f2 = jnp.dot(f1, w2_ref[...], preferred_element_type=f32) + b2
    # TODO(synk): dropout omitted (identity at inference / eval mode).

    o_ref[...] = (residual + f2).astype(o_ref.dtype)


def _pad_lanes(v, width=_LANES):
    v = jnp.asarray(v, jnp.float32)
    if v.ndim == 1:
        return jnp.pad(v, (0, width - v.shape[0]))
    return jnp.pad(v, ((0, 0), (0, width - v.shape[-1])))


def decoder_layer_pallas(trg, trg_mask, params, num_heads):
    """params = (ln1_g, ln1_b, wq, bq, wk, bk, wv, bv, wo, bo,
                 ln2_g, ln2_b, w1, b1, w2, b2);  weights stored [D_in, D_out]."""
    (ln1_g, ln1_b, wq, bq, wk, bk, wv, bv, wo, bo,
     ln2_g, ln2_b, w1, b1, w2, b2) = params
    B, S, D = trg.shape
    H = num_heads
    dk = D // H
    d_ff = w1.shape[1]

    # ---- host-side parameter preparation (one-time folds for a fixed parameter set) ----
    inv_sqrt_dk = 1.0 / math.sqrt(dk)
    wqkv = jnp.concatenate([wq * inv_sqrt_dk, wk, wv], axis=1)        # (D, 3D)
    bqkv = jnp.concatenate([bq * inv_sqrt_dk, bk, bv], axis=0)        # (3D,)

    head_mask = (jnp.arange(D)[None, :] // dk
                 == jnp.arange(H)[:, None]).astype(jnp.float32)       # (H, D)
    mask_bias = jnp.where(trg_mask == 0, jnp.float32(-10000000000.0),
                          jnp.float32(0.0))                           # (S, S)

    # One (rows, 128) f32 slab carrying every small operand -> a single DMA.
    vec_rows = jnp.stack([_pad_lanes(ln1_g), _pad_lanes(ln1_b), _pad_lanes(bo),
                          _pad_lanes(ln2_g), _pad_lanes(ln2_b), _pad_lanes(b2),
                          _pad_lanes(bqkv), _pad_lanes(b1)], axis=0)  # (8, 128)
    slab = jnp.concatenate([vec_rows,
                            _pad_lanes(mask_bias),                    # rows 8 .. 8+S-1
                            _pad_lanes(head_mask)], axis=0)           # rows 8+S .. 8+S+H-1
    pad_rows = (-slab.shape[0]) % 8
    if pad_rows:
        slab = jnp.pad(slab, ((0, pad_rows), (0, 0)))

    vmem = functools.partial(pl.BlockSpec, memory_space=pltpu.MemorySpace.VMEM)
    kernel = functools.partial(_decoder_layer_kernel, B, S, D, H, d_ff)

    out2 = pl.pallas_call(
        kernel,
        out_shape=jax.ShapeDtypeStruct((B * S, D), trg.dtype),
        in_specs=[vmem()] * 6,
        out_specs=vmem(),
    )(trg.reshape(B * S, D), slab, wqkv, wo, w1, w2)
    return out2.reshape(B, S, D)


def decoder_layer_reference(trg, trg_mask, params, num_heads):
    """Pure-JAX reference matching the PyTorch DecoderLayer semantics (eval mode)."""
    (ln1_g, ln1_b, wq, bq, wk, bk, wv, bv, wo, bo,
     ln2_g, ln2_b, w1, b1, w2, b2) = params
    B, S, D = trg.shape
    dk = D // num_heads

    def ln(x, g, b, eps=1e-5):
        mu = jnp.mean(x, axis=-1, keepdims=True)
        var = jnp.mean(jnp.square(x - mu), axis=-1, keepdims=True)
        return (x - mu) / jnp.sqrt(var + eps) * g + b

    h = ln(trg, ln1_g, ln1_b)
    qp, kp, vp = h @ wq + bq, h @ wk + bk, h @ wv + bv

    def heads(t):
        return t.reshape(B, S, num_heads, dk).transpose(0, 2, 1, 3)

    qh, kh, vh = heads(qp), heads(kp), heads(vp)
    scores = jnp.einsum('bhqd,bhkd->bhqk', qh, kh) / math.sqrt(dk)
    scores = jnp.where(trg_mask[None, None] == 0, -10000000000.0, scores)
    w = jax.nn.softmax(scores.astype(jnp.float32), axis=-1)
    ctx = jnp.einsum('bhqk,bhkd->bhqd', w, vh)
    attn = ctx.transpose(0, 2, 1, 3).reshape(B, S, D) @ wo + bo

    residual = attn
    h2 = ln(attn, ln2_g, ln2_b)
    f1 = h2 @ w1 + b1
    f1 = 0.5 * f1 * (1.0 + jax.lax.erf(f1 * _SQRT1_2))   # exact F.gelu (erf form)
    ff = f1 @ w2 + b2                                    # dropout: identity (eval)
    return residual + ff


if __name__ == "__main__":
    B, S, D, H, D_FF = 2, 8, 32, 4, 64          # batch, seq, d_model, heads, d_ff

    key = jax.random.PRNGKey(0)
    keys = jax.random.split(key, 20)
    scale = 0.05

    trg = jax.random.normal(keys[0], (B, S, D), dtype=jnp.float32)
    trg_mask = jnp.tril(jnp.ones((S, S), dtype=jnp.float32))   # causal mask

    ln1_g = 1.0 + 0.1 * jax.random.normal(keys[1], (D,), dtype=jnp.float32)
    ln1_b = 0.1 * jax.random.normal(keys[2], (D,), dtype=jnp.float32)
    wq = scale * jax.random.normal(keys[3], (D, D), dtype=jnp.float32)
    bq = scale * jax.random.normal(keys[4], (D,), dtype=jnp.float32)
    wk = scale * jax.random.normal(keys[5], (D, D), dtype=jnp.float32)
    bk = scale * jax.random.normal(keys[6], (D,), dtype=jnp.float32)
    wv = scale * jax.random.normal(keys[7], (D, D), dtype=jnp.float32)
    bv = scale * jax.random.normal(keys[8], (D,), dtype=jnp.float32)
    wo = scale * jax.random.normal(keys[9], (D, D), dtype=jnp.float32)
    bo = scale * jax.random.normal(keys[10], (D,), dtype=jnp.float32)
    ln2_g = 1.0 + 0.1 * jax.random.normal(keys[11], (D,), dtype=jnp.float32)
    ln2_b = 0.1 * jax.random.normal(keys[12], (D,), dtype=jnp.float32)
    w1 = scale * jax.random.normal(keys[13], (D, D_FF), dtype=jnp.float32)
    b1 = scale * jax.random.normal(keys[14], (D_FF,), dtype=jnp.float32)
    w2 = scale * jax.random.normal(keys[15], (D_FF, D), dtype=jnp.float32)
    b2 = scale * jax.random.normal(keys[16], (D,), dtype=jnp.float32)

    params = (ln1_g, ln1_b, wq, bq, wk, bk, wv, bv, wo, bo,
              ln2_g, ln2_b, w1, b1, w2, b2)

    out = decoder_layer_pallas(trg, trg_mask, params, H)
    out = jax.block_until_ready(out)

    ref = decoder_layer_reference(trg, trg_mask, params, H)
    ref = jax.block_until_ready(ref)

    # Tolerance covers the approximate EUP reciprocal in softmax (~1e-4 rel) and the
    # 1.5e-7 erf approximation; everything else is exact-f32-equivalent to the reference.
    np.testing.assert_allclose(np.asarray(out), np.asarray(ref),
                               rtol=2e-3, atol=2e-3)
    print("KERNEL_OK")
</pallas_src>

<mosaic_0001>
module attributes {stable_mosaic.version = 11 : i64} {
  func.func @_decoder_layer_kernel(%arg0: memref<16x32xf32, #tpu.memory_space<vmem>>, %arg1: memref<24x128xf32, #tpu.memory_space<vmem>>, %arg2: memref<32x96xf32, #tpu.memory_space<vmem>>, %arg3: memref<32x32xf32, #tpu.memory_space<vmem>>, %arg4: memref<32x64xf32, #tpu.memory_space<vmem>>, %arg5: memref<64x32xf32, #tpu.memory_space<vmem>>, %arg6: memref<16x32xf32, #tpu.memory_space<vmem>>) attributes {dimension_semantics = [], scalar_prefetch = 0 : i64, scratch_operands = 0 : i64, tpu.core_type = #tpu.core_type<tc>} {
    %c0 = arith.constant 0 : index
    %c0_0 = arith.constant 0 : index
    %0 = vector.load %arg0[%c0, %c0_0] : memref<16x32xf32, #tpu.memory_space<vmem>>, vector<16x32xf32>
    %c0_1 = arith.constant 0 : index
    %c0_2 = arith.constant 0 : index
    %1 = vector.load %arg1[%c0_1, %c0_2] : memref<24x128xf32, #tpu.memory_space<vmem>>, vector<1x32xf32>
    %c1 = arith.constant 1 : index
    %c0_3 = arith.constant 0 : index
    %2 = vector.load %arg1[%c1, %c0_3] : memref<24x128xf32, #tpu.memory_space<vmem>>, vector<1x32xf32>
    %c2 = arith.constant 2 : index
    %c0_4 = arith.constant 0 : index
    %3 = vector.load %arg1[%c2, %c0_4] : memref<24x128xf32, #tpu.memory_space<vmem>>, vector<1x32xf32>
    %c3 = arith.constant 3 : index
    %c0_5 = arith.constant 0 : index
    %4 = vector.load %arg1[%c3, %c0_5] : memref<24x128xf32, #tpu.memory_space<vmem>>, vector<1x32xf32>
    %c4 = arith.constant 4 : index
    %c0_6 = arith.constant 0 : index
    %5 = vector.load %arg1[%c4, %c0_6] : memref<24x128xf32, #tpu.memory_space<vmem>>, vector<1x32xf32>
    %c5 = arith.constant 5 : index
    %c0_7 = arith.constant 0 : index
    %6 = vector.load %arg1[%c5, %c0_7] : memref<24x128xf32, #tpu.memory_space<vmem>>, vector<1x32xf32>
    %c6 = arith.constant 6 : index
    %c0_8 = arith.constant 0 : index
    %7 = vector.load %arg1[%c6, %c0_8] : memref<24x128xf32, #tpu.memory_space<vmem>>, vector<1x96xf32>
    %c7 = arith.constant 7 : index
    %c0_9 = arith.constant 0 : index
    %8 = vector.load %arg1[%c7, %c0_9] : memref<24x128xf32, #tpu.memory_space<vmem>>, vector<1x64xf32>
    %c8 = arith.constant 8 : index
    %c0_10 = arith.constant 0 : index
    %9 = vector.load %arg1[%c8, %c0_10] : memref<24x128xf32, #tpu.memory_space<vmem>>, vector<8x8xf32>
    %c16 = arith.constant 16 : index
    %c0_11 = arith.constant 0 : index
    %10 = vector.load %arg1[%c16, %c0_11] : memref<24x128xf32, #tpu.memory_space<vmem>>, vector<4x32xf32>
    %cst = arith.constant dense<0.000000e+00> : vector<16xf32>
    %11 = vector.multi_reduction <add>, %0, %cst [1] : vector<16x32xf32> to vector<16xf32>
    %12 = vector.shape_cast %11 : vector<16xf32> to vector<16x1xf32>
    %cst_12 = arith.constant 3.200000e+01 : f32
    %13 = vector.broadcast %cst_12 : f32 to vector<16x1xf32>
    %14 = arith.divf %12, %13 : vector<16x1xf32>
    %15 = vector.broadcast %14 : vector<16x1xf32> to vector<16x32xf32>
    %16 = arith.subf %0, %15 : vector<16x32xf32>
    %17 = arith.mulf %16, %16 : vector<16x32xf32>
    %cst_13 = arith.constant dense<0.000000e+00> : vector<16xf32>
    %18 = vector.multi_reduction <add>, %17, %cst_13 [1] : vector<16x32xf32> to vector<16xf32>
    %19 = vector.shape_cast %18 : vector<16xf32> to vector<16x1xf32>
    %cst_14 = arith.constant 3.200000e+01 : f32
    %20 = vector.broadcast %cst_14 : f32 to vector<16x1xf32>
    %21 = arith.divf %19, %20 : vector<16x1xf32>
    %22 = vector.broadcast %14 : vector<16x1xf32> to vector<16x32xf32>
    %23 = arith.subf %0, %22 : vector<16x32xf32>
    %cst_15 = arith.constant 9.99999974E-6 : f32
    %24 = vector.broadcast %cst_15 : f32 to vector<16x1xf32>
    %25 = arith.addf %21, %24 : vector<16x1xf32>
    %26 = math.rsqrt %25 : vector<16x1xf32>
    %27 = vector.broadcast %26 : vector<16x1xf32> to vector<16x32xf32>
    %28 = arith.mulf %23, %27 : vector<16x32xf32>
    %29 = vector.broadcast %1 : vector<1x32xf32> to vector<16x32xf32>
    %30 = arith.mulf %28, %29 : vector<16x32xf32>
    %31 = vector.broadcast %2 : vector<1x32xf32> to vector<16x32xf32>
    %32 = arith.addf %30, %31 : vector<16x32xf32>
    %c0_16 = arith.constant 0 : index
    %c0_17 = arith.constant 0 : index
    %33 = vector.load %arg2[%c0_16, %c0_17] : memref<32x96xf32, #tpu.memory_space<vmem>>, vector<32x96xf32>
    %cst_18 = arith.constant dense<0.000000e+00> : vector<16x96xf32>
    %34 = tpu.matmul %32, %33, %cst_18 {dimension_numbers = #tpu.dot_dimension_numbers<[1], [0], [0], [1], [0, 0, 1, 1], [], []>} : vector<16x32xf32>, vector<32x96xf32>, vector<16x96xf32> -> vector<16x96xf32>
    %35 = vector.broadcast %7 : vector<1x96xf32> to vector<16x96xf32>
    %36 = arith.addf %34, %35 : vector<16x96xf32>
    %37 = vector.extract_strided_slice %36 {offsets = [0, 0], sizes = [16, 32], strides = [1, 1]} : vector<16x96xf32> to vector<16x32xf32>
    %38 = vector.shape_cast %37 : vector<16x32xf32> to vector<2x8x32xf32>
    %39 = vector.extract_strided_slice %36 {offsets = [0, 32], sizes = [16, 32], strides = [1, 1]} : vector<16x96xf32> to vector<16x32xf32>
    %40 = vector.shape_cast %39 : vector<16x32xf32> to vector<2x8x32xf32>
    %41 = vector.extract_strided_slice %36 {offsets = [0, 64], sizes = [16, 32], strides = [1, 1]} : vector<16x96xf32> to vector<16x32xf32>
    %42 = vector.shape_cast %41 : vector<16x32xf32> to vector<2x8x32xf32>
    %43 = vector.shape_cast %10 : vector<4x32xf32> to vector<4x1x1x32xf32>
    %44 = vector.shape_cast %38 : vector<2x8x32xf32> to vector<1x2x8x32xf32>
    %45 = vector.broadcast %44 : vector<1x2x8x32xf32> to vector<4x2x8x32xf32>
    %46 = vector.broadcast %43 : vector<4x1x1x32xf32> to vector<4x2x8x32xf32>
    %47 = arith.mulf %45, %46 : vector<4x2x8x32xf32>
    %48 = vector.shape_cast %47 : vector<4x2x8x32xf32> to vector<8x8x32xf32>
    %49 = vector.shape_cast %42 : vector<2x8x32xf32> to vector<1x2x8x32xf32>
    %50 = vector.broadcast %49 : vector<1x2x8x32xf32> to vector<4x2x8x32xf32>
    %51 = vector.broadcast %43 : vector<4x1x1x32xf32> to vector<4x2x8x32xf32>
    %52 = arith.mulf %50, %51 : vector<4x2x8x32xf32>
    %53 = vector.shape_cast %52 : vector<4x2x8x32xf32> to vector<8x8x32xf32>
    %54 = tpu.concatenate %40, %40, %40, %40 in 0 : vector<2x8x32xf32>, vector<2x8x32xf32>, vector<2x8x32xf32>, vector<2x8x32xf32> -> vector<8x8x32xf32>
    "tpu.trace_start"() <{level = 10 : i32, message = "gqd,gkd->gqk"}> : () -> ()
    %cst_19 = arith.constant dense<0.000000e+00> : vector<8x8x8xf32>
    %55 = tpu.matmul %48, %54, %cst_19 {dimension_numbers = #tpu.dot_dimension_numbers<[2], [2], [1], [1], [0, 0, 0, 1, 1, 1], [0], [0]>} : vector<8x8x32xf32>, vector<8x8x32xf32>, vector<8x8x8xf32> -> vector<8x8x8xf32>
    "tpu.trace_stop"() : () -> ()
    %56 = vector.shape_cast %9 : vector<8x8xf32> to vector<1x8x8xf32>
    %57 = vector.broadcast %56 : vector<1x8x8xf32> to vector<8x8x8xf32>
    %58 = arith.addf %55, %57 : vector<8x8x8xf32>
    %cst_20 = arith.constant dense<0xFF800000> : vector<8x8xf32>
    %59 = vector.multi_reduction <maximumf>, %58, %cst_20 [2] : vector<8x8x8xf32> to vector<8x8xf32>
    %60 = vector.shape_cast %59 : vector<8x8xf32> to vector<8x8x1xf32>
    %61 = vector.broadcast %60 : vector<8x8x1xf32> to vector<8x8x8xf32>
    %62 = arith.subf %58, %61 : vector<8x8x8xf32>
    %63 = math.exp %62 : vector<8x8x8xf32>
    %cst_21 = arith.constant dense<0.000000e+00> : vector<8x8xf32>
    %64 = vector.multi_reduction <add>, %63, %cst_21 [2] : vector<8x8x8xf32> to vector<8x8xf32>
    %65 = vector.shape_cast %64 : vector<8x8xf32> to vector<8x8x1xf32>
    %66 = tpu.reciprocal %65 {approx = true} : vector<8x8x1xf32> -> vector<8x8x1xf32>
    %67 = vector.broadcast %66 : vector<8x8x1xf32> to vector<8x8x8xf32>
    %68 = arith.mulf %63, %67 : vector<8x8x8xf32>
    "tpu.trace_start"() <{level = 10 : i32, message = "gqk,gkd->gqd"}> : () -> ()
    %cst_22 = arith.constant dense<0.000000e+00> : vector<8x8x32xf32>
    %69 = tpu.matmul %68, %53, %cst_22 {dimension_numbers = #tpu.dot_dimension_numbers<[2], [1], [1], [2], [0, 0, 0, 1, 1, 2], [0], [0]>} : vector<8x8x8xf32>, vector<8x8x32xf32>, vector<8x8x32xf32> -> vector<8x8x32xf32>
    "tpu.trace_stop"() : () -> ()
    %70 = vector.shape_cast %69 : vector<8x8x32xf32> to vector<4x2x8x32xf32>
    %71 = vector.extract_strided_slice %70 {offsets = [0, 0, 0, 0], sizes = [1, 2, 8, 32], strides = [1, 1, 1, 1]} : vector<4x2x8x32xf32> to vector<1x2x8x32xf32>
    %72 = vector.shape_cast %71 : vector<1x2x8x32xf32> to vector<2x8x32xf32>
    %73 = vector.extract_strided_slice %70 {offsets = [1, 0, 0, 0], sizes = [1, 2, 8, 32], strides = [1, 1, 1, 1]} : vector<4x2x8x32xf32> to vector<1x2x8x32xf32>
    %74 = vector.shape_cast %73 : vector<1x2x8x32xf32> to vector<2x8x32xf32>
    %75 = arith.addf %72, %74 : vector<2x8x32xf32>
    %76 = vector.extract_strided_slice %70 {offsets = [2, 0, 0, 0], sizes = [1, 2, 8, 32], strides = [1, 1, 1, 1]} : vector<4x2x8x32xf32> to vector<1x2x8x32xf32>
    %77 = vector.shape_cast %76 : vector<1x2x8x32xf32> to vector<2x8x32xf32>
    %78 = arith.addf %75, %77 : vector<2x8x32xf32>
    %79 = vector.extract_strided_slice %70 {offsets = [3, 0, 0, 0], sizes = [1, 2, 8, 32], strides = [1, 1, 1, 1]} : vector<4x2x8x32xf32> to vector<1x2x8x32xf32>
    %80 = vector.shape_cast %79 : vector<1x2x8x32xf32> to vector<2x8x32xf32>
    %81 = arith.addf %78, %80 : vector<2x8x32xf32>
    %82 = vector.shape_cast %81 : vector<2x8x32xf32> to vector<16x32xf32>
    %c0_23 = arith.constant 0 : index
    %c0_24 = arith.constant 0 : index
    %83 = vector.load %arg3[%c0_23, %c0_24] : memref<32x32xf32, #tpu.memory_space<vmem>>, vector<32x32xf32>
    %cst_25 = arith.constant dense<0.000000e+00> : vector<16x32xf32>
    %84 = tpu.matmul %82, %83, %cst_25 {dimension_numbers = #tpu.dot_dimension_numbers<[1], [0], [0], [1], [0, 0, 1, 1], [], []>} : vector<16x32xf32>, vector<32x32xf32>, vector<16x32xf32> -> vector<16x32xf32>
    %85 = vector.broadcast %3 : vector<1x32xf32> to vector<16x32xf32>
    %86 = arith.addf %84, %85 : vector<16x32xf32>
    %cst_26 = arith.constant dense<0.000000e+00> : vector<16xf32>
    %87 = vector.multi_reduction <add>, %86, %cst_26 [1] : vector<16x32xf32> to vector<16xf32>
    %88 = vector.shape_cast %87 : vector<16xf32> to vector<16x1xf32>
    %cst_27 = arith.constant 3.200000e+01 : f32
    %89 = vector.broadcast %cst_27 : f32 to vector<16x1xf32>
    %90 = arith.divf %88, %89 : vector<16x1xf32>
    %91 = vector.broadcast %90 : vector<16x1xf32> to vector<16x32xf32>
    %92 = arith.subf %86, %91 : vector<16x32xf32>
    %93 = arith.mulf %92, %92 : vector<16x32xf32>
    %cst_28 = arith.constant dense<0.000000e+00> : vector<16xf32>
    %94 = vector.multi_reduction <add>, %93, %cst_28 [1] : vector<16x32xf32> to vector<16xf32>
    %95 = vector.shape_cast %94 : vector<16xf32> to vector<16x1xf32>
    %cst_29 = arith.constant 3.200000e+01 : f32
    %96 = vector.broadcast %cst_29 : f32 to vector<16x1xf32>
    %97 = arith.divf %95, %96 : vector<16x1xf32>
    %98 = vector.broadcast %90 : vector<16x1xf32> to vector<16x32xf32>
    %99 = arith.subf %86, %98 : vector<16x32xf32>
    %cst_30 = arith.constant 9.99999974E-6 : f32
    %100 = vector.broadcast %cst_30 : f32 to vector<16x1xf32>
    %101 = arith.addf %97, %100 : vector<16x1xf32>
    %102 = math.rsqrt %101 : vector<16x1xf32>
    %103 = vector.broadcast %102 : vector<16x1xf32> to vector<16x32xf32>
    %104 = arith.mulf %99, %103 : vector<16x32xf32>
    %105 = vector.broadcast %4 : vector<1x32xf32> to vector<16x32xf32>
    %106 = arith.mulf %104, %105 : vector<16x32xf32>
    %107 = vector.broadcast %5 : vector<1x32xf32> to vector<16x32xf32>
    %108 = arith.addf %106, %107 : vector<16x32xf32>
    %c0_31 = arith.constant 0 : index
    %c0_32 = arith.constant 0 : index
    %109 = vector.load %arg4[%c0_31, %c0_32] : memref<32x64xf32, #tpu.memory_space<vmem>>, vector<32x64xf32>
    %cst_33 = arith.constant dense<0.000000e+00> : vector<16x64xf32>
    %110 = tpu.matmul %108, %109, %cst_33 {dimension_numbers = #tpu.dot_dimension_numbers<[1], [0], [0], [1], [0, 0, 1, 1], [], []>} : vector<16x32xf32>, vector<32x64xf32>, vector<16x64xf32> -> vector<16x64xf32>
    %111 = vector.broadcast %8 : vector<1x64xf32> to vector<16x64xf32>
    %112 = arith.addf %110, %111 : vector<16x64xf32>
    %cst_34 = arith.constant 5.000000e-01 : f32
    %113 = vector.broadcast %cst_34 : f32 to vector<16x64xf32>
    %114 = arith.mulf %113, %112 : vector<16x64xf32>
    %cst_35 = arith.constant 0.707106769 : f32
    %115 = vector.broadcast %cst_35 : f32 to vector<16x64xf32>
    %116 = arith.mulf %112, %115 : vector<16x64xf32>
    %117 = math.absf %116 : vector<16x64xf32>
    %cst_36 = arith.constant 0.327591091 : f32
    %118 = vector.broadcast %cst_36 : f32 to vector<16x64xf32>
    %119 = arith.mulf %118, %117 : vector<16x64xf32>
    %cst_37 = arith.constant 1.000000e+00 : f32
    %120 = vector.broadcast %cst_37 : f32 to vector<16x64xf32>
    %121 = arith.addf %120, %119 : vector<16x64xf32>
    %cst_38 = arith.constant 1.000000e+00 : f32
    %122 = vector.broadcast %cst_38 : f32 to vector<16x64xf32>
    %123 = arith.divf %122, %121 : vector<16x64xf32>
    %cst_39 = arith.constant 1.06140542 : f32
    %124 = vector.broadcast %cst_39 : f32 to vector<16x64xf32>
    %125 = arith.mulf %124, %123 : vector<16x64xf32>
    %cst_40 = arith.constant -1.45315206 : f32
    %126 = vector.broadcast %cst_40 : f32 to vector<16x64xf32>
    %127 = arith.addf %125, %126 : vector<16x64xf32>
    %128 = arith.mulf %127, %123 : vector<16x64xf32>
    %cst_41 = arith.constant 1.42141378 : f32
    %129 = vector.broadcast %cst_41 : f32 to vector<16x64xf32>
    %130 = arith.addf %128, %129 : vector<16x64xf32>
    %131 = arith.mulf %130, %123 : vector<16x64xf32>
    %cst_42 = arith.constant -0.284496725 : f32
    %132 = vector.broadcast %cst_42 : f32 to vector<16x64xf32>
    %133 = arith.addf %131, %132 : vector<16x64xf32>
    %134 = arith.mulf %133, %123 : vector<16x64xf32>
    %cst_43 = arith.constant 0.254829586 : f32
    %135 = vector.broadcast %cst_43 : f32 to vector<16x64xf32>
    %136 = arith.addf %134, %135 : vector<16x64xf32>
    %137 = arith.mulf %136, %123 : vector<16x64xf32>
    %138 = arith.mulf %117, %117 : vector<16x64xf32>
    %cst_44 = arith.constant 0.000000e+00 : f32
    %139 = vector.broadcast %cst_44 : f32 to vector<16x64xf32>
    %140 = arith.subf %139, %138 : vector<16x64xf32>
    %141 = math.exp %140 : vector<16x64xf32>
    %142 = arith.mulf %137, %141 : vector<16x64xf32>
    %cst_45 = arith.constant 1.000000e+00 : f32
    %143 = vector.broadcast %cst_45 : f32 to vector<16x64xf32>
    %144 = arith.subf %143, %142 : vector<16x64xf32>
    %cst_46 = arith.constant 0.000000e+00 : f32
    %145 = vector.broadcast %cst_46 : f32 to vector<16x64xf32>
    %146 = arith.cmpf oge, %116, %145 : vector<16x64xf32>
    %cst_47 = arith.constant 0.000000e+00 : f32
    %147 = vector.broadcast %cst_47 : f32 to vector<16x64xf32>
    %148 = arith.subf %147, %144 : vector<16x64xf32>
    %149 = arith.select %146, %144, %148 : vector<16x64xi1>, vector<16x64xf32>
    %cst_48 = arith.constant 1.000000e+00 : f32
    %150 = vector.broadcast %cst_48 : f32 to vector<16x64xf32>
    %151 = arith.addf %150, %149 : vector<16x64xf32>
    %152 = arith.mulf %114, %151 : vector<16x64xf32>
    %c0_49 = arith.constant 0 : index
    %c0_50 = arith.constant 0 : index
    %153 = vector.load %arg5[%c0_49, %c0_50] : memref<64x32xf32, #tpu.memory_space<vmem>>, vector<64x32xf32>
    %cst_51 = arith.constant dense<0.000000e+00> : vector<16x32xf32>
    %154 = tpu.matmul %152, %153, %cst_51 {dimension_numbers = #tpu.dot_dimension_numbers<[1], [0], [0], [1], [0, 0, 1, 1], [], []>} : vector<16x64xf32>, vector<64x32xf32>, vector<16x32xf32> -> vector<16x32xf32>
    %155 = vector.broadcast %6 : vector<1x32xf32> to vector<16x32xf32>
    %156 = arith.addf %154, %155 : vector<16x32xf32>
    %157 = arith.addf %86, %156 : vector<16x32xf32>
    %c0_52 = arith.constant 0 : index
    %c0_53 = arith.constant 0 : index
    %158 = vector.load %arg6[%c0_52, %c0_53] : memref<16x32xf32, #tpu.memory_space<vmem>>, vector<16x32xf32>
    tpu.vector_store %arg6[%c0_52, %c0_53], %157 {strides = array<i32>} : memref<16x32xf32, #tpu.memory_space<vmem>>, vector<16x32xf32>,
    return
  }
}

</mosaic_0001>

<bundles_post_ra>
// kernel: tpu_custom_call.1
= control target key start
LH: loop header
LB: loop body
LE: loop exit
PB: predicated region body
PF: predicated region fallthrough
CT: control target
= control target key end

     0   :  { %11 = vsyncpa [#allocation3], 0  ;;  %s2710_s0 = inlined_call_operand.hbm [shape: f32[16,32], index: 0, kind: input, shape index: {}]   ;;  %s2711_s1 = inlined_call_operand.hbm [shape: f32[24,128], index: 1, kind: input, shape index: {}]   ;;  %s2712_s2 = inlined_call_operand.vmem [shape: f32[32,96], index: 2, kind: input, shape index: {}]   ;;  %s2713_s3 = inlined_call_operand.vmem [shape: f32[32,32], index: 3, kind: input, shape index: {}]   ;;  %s2714_s4 = inlined_call_operand.vmem [shape: f32[32,64], index: 4, kind: input, shape index: {}]   ;;  %s2715_s5 = inlined_call_operand.vmem [shape: f32[64,32], index: 5, kind: input, shape index: {}]   ;;  %s2716_s6 = inlined_call_operand.hbm [shape: f32[16,32], index: 6, kind: output, shape index: {}]  }
   0x1   :  { %12 = vsyncpa [#allocation6], 0 }
   0x2   :  { %13 = vsyncpa [#allocation4], 0  ;;  %s2372_s21 = smov [#allocation2]   ;;  %s2300_s25 = scalar_lea.hbm %s2710_s0, 256 }
   0x3   :  { %s19_s22 = sshll.u32 %s2372_s21, 4  ;;  %p2301_p0 = scmp.ne.s32.totalorder %s2710_s0, %s2300_s25  ;;  %s20_s22 = int_to_ptr.vmem [resolvable:$true] %s19_s22 }
   0x4   :  { %p2304_p1 = scmp.lt.u32.totalorder %s2300_s25, %s2710_s0 }
   0x6   :  { %p2306_p2 = pnand %p2304_p1, %p2301_p0 }
   0x8   :  { %2309 = shalt.err (!%p2306_p2)
}
   0x9   :  { %s2310_s30 = scalar_lea.vmem %s20_s22, 256  ;;  %p2315_p4 = scmp.lt.s32.totalorder %s20_s22, %s20_s22 }
   0xa   :  { %p2311_p3 = scmp.ne.s32.totalorder %s20_s22, %s2310_s30  ;;  %p2316_p5 = scmp.lt.s32.totalorder %s2310_s30, %s2310_s30 }
   0xc   :  { %p2317_p6 = por %p2316_p5, %p2315_p4 }
   0xe   :  { %p2318_p7 = pnand %p2317_p6, %p2311_p3 }
  0x10   :  { %2321 = shalt.err (!%p2318_p7)
}
  0x11   :  { %s2373_s7 = smov 128   ;;  %s2374_s8 = smov 8  }
  0x12   :  { %25 = dma.hbm_to_vmem [thread:$0]  %s2710_s0, 256, %s20_s22, [#allocation3], %s2373_s7, %s2373_s7, %s2374_s8  }
  0x13   :  { %s2375_s11 = smov [#allocation5]   ;;  %s2322_s15 = scalar_lea.hbm %s2711_s1, 384 }
  0x14   :  { %s31_s12 = sshll.u32 %s2375_s11, 4  ;;  %p2323_p8 = scmp.ne.s32.totalorder %s2711_s1, %s2322_s15  ;;  %s32_s12 = int_to_ptr.vmem [resolvable:$true] %s31_s12 }
  0x15   :  { %p2326_p9 = scmp.lt.u32.totalorder %s2322_s15, %s2711_s1 }
  0x17   :  { %p2328_p10 = pnand %p2326_p9, %p2323_p8 }
  0x19   :  { %2331 = shalt.err (!%p2328_p10)
}
  0x1a   :  { %s2332_s20 = scalar_lea.vmem %s32_s12, 384  ;;  %p2337_p12 = scmp.lt.s32.totalorder %s32_s12, %s32_s12 }
  0x1b   :  { %p2333_p11 = scmp.ne.s32.totalorder %s32_s12, %s2332_s20  ;;  %p2338_p13 = scmp.lt.s32.totalorder %s2332_s20, %s2332_s20 }
  0x1d   :  { %p2339_p0 = por %p2338_p13, %p2337_p12 }
  0x1f   :  { %p2340_p1 = pnand %p2339_p0, %p2333_p11 }
  0x21   :  { %2343 = shalt.err (!%p2340_p1)
}
  0x22   :  { %37 = dma.hbm_to_vmem [thread:$0]  %s2711_s1, 384, %s32_s12, [#allocation6], %s2373_s7, %s2373_s7, %s2374_s8  }
  0x23   :  { %2366 = dma.done.wait [#allocation3], 256  }
  0x24   :  { %2367 = vsyncadd [#allocation3], 4294967040 }
  0x25   :  { %2368 = dma.done.wait [#allocation6], 384  }
  0x26   :  { %2369 = vsyncadd [#allocation6], 4294966912  ;;  %vm64_vm0 = vcmask 261120   ;;  %v52_v0 = vld [vmem:[#allocation2] sm:$0xff]  ;;  %v53_v1 = vld [vmem:[#allocation2 + $0x8] sm:$0xff]  ;;  %v205_v38 = vlaneseq  ;;  %v2377_v39 = vmov 0.0  }
  0x27   :  { %v65_v2 = vsel %vm64_vm0, %v52_v0, 0.0  ;;  %v68_v3 = vsel %vm64_vm0, %v53_v1, 0.0  ;;  %v104_v14 = vld [vmem:[%s2712_s2] sm:$0xff]  ;;  %v105_v15 = vld [vmem:[%s2712_s2 + $0x8] sm:$0xff]  ;;  %v106_v16 = vld [vmem:[%s2712_s2 + $0x10] sm:$0xff]  ;;  %2079 = vmatprep.subr.mxu0 %v2377_v39  ;;  %vm2378_vm1 = vmmov 0  }
  0x28   :  { %66 = vadd.xlane.f32.xlu0 %v65_v2  ;;  %v2190_v17 = vpack.c.bf16 %v105_v15, %v104_v14  ;;  %v107_v18 = vld [vmem:[%s2712_s2 + $0x18] sm:$0xff]  ;;  %v1957_v27 = vld [vmem:[#allocation5] ss:$0 sm:$0xff]  ;;  %v1958_v29 = vld [vmem:[#allocation5 + $0x1] ss:$0 sm:$0xff]  ;;  %2081 = vmatprep.mubr.msk.f32.mxu0 %vm2378_vm1, %v2377_v39  ;;  %v206_v41 = vshrl.u32 %v205_v38, 7 }
  0x29   :  { %v2194_v19 = vpack.c.bf16 %v107_v18, %v106_v16  ;;  %v2376_v36 = vmov 1966171168   ;;  %v1962_v42 = vld.sshfl [vmem:[#allocation5 + $0x10] sm:$0x33 pattern:$0x75316420] }
  0x2a   :  { %2191 = vmatprep.subr.bf16.mxu1 %v2190_v17  ;;  %v203_v37 = vunpack.c.l.s4 %v2376_v36  ;;  %v1959_v44 = vld [vmem:[#allocation5 + $0x6] ss:$0 sm:$0xff]  ;;  %v201_v45 = vcombine.high %v1962_v42, %v1962_v42  ;;  %v220_v49 = vsub.s32 0, %v206_v41  ;;  %s2379_s2 = smov 96   ;;  %s2380_s29 = smov 64   ;;  %vm860_vm2 = vcmask 64512  }
  0x2b   :  { %2193 = vmatpush3.bf16.msra.mxu1 %v2190_v17  ;;  %vm1853_vm5 = vcmask 523264  }
  0x2c   :  { %69 = vadd.xlane.f32.xlu0 %v68_v3  ;;  %2195 = vmatprep.subr.bf16.mxu1 %v2194_v19  ;;  %v204_v40 = vunpack.c.0.s8 %v203_v37 }
  0x2e   :  { %v207_v43 = vsub.s32 %v204_v40, %v206_v41 }
  0x2f   :  { %2197 = vmatpush3.bf16.msra.mxu1 %v2194_v19 }
  0x30   :  { %2069 = vmatprep.subr.mxu1 %v2377_v39  ;;  %v208_v50 = vrot.slane %v1962_v42, %v207_v43  ;;  %v215_v52 = vrot.slane %v201_v45, %v207_v43 }
  0x32   :  { %v225_v53 = vrot.slane %v215_v52, %v220_v49  ;;  %v216_v54 = vcombine.high %v208_v50, %v208_v50  ;;  %v221_v55 = vrot.slane %v208_v50, %v220_v49  ;;  %v217_v57 = vcombine.high %v215_v52, %v215_v52 }
  0x34   :  { %v229_v56 = vrot.slane %v216_v54, %v220_v49  ;;  %v233_v58 = vrot.slane %v217_v57, %v220_v49 }
  0xb5   :  { %v67_v4 = vpop.xlane.xlu0 %66 }
  0xb6   :  { %v72_v5 = vmul.f32 0.03125, %v67_v4 }
  0xb8   :  { %v74_v6 = vsub.f32 %v52_v0, %v72_v5  ;;  %v62_v5 = vld [vmem:[#allocation5 + $0x8] sm:$0xff] }
  0xb9   :  { %v70_v7 = vpop.xlane.xlu0 %69 }
  0xba   :  { %v73_v8 = vmul.f32 0.03125, %v70_v7  ;;  %v76_v9 = vmul.f32 %v74_v6, %v74_v6 }
  0xbc   :  { %v75_v10 = vsub.f32 %v53_v1, %v73_v8  ;;  %v78_v11 = vsel %vm64_vm0, %v76_v9, 0.0 }
  0xbd   :  { %79 = vadd.xlane.f32.xlu1 %v78_v11 }
  0xbe   :  { %v77_v12 = vmul.f32 %v75_v10, %v75_v10 }
  0xc0   :  { %v81_v13 = vsel %vm64_vm0, %v77_v12, 0.0 }
  0xc1   :  { %82 = vadd.xlane.f32.xlu1 %v81_v13 }
 0x14a   :  { %v80_v20 = vpop.xlane.xlu1 %79 }
 0x14b   :  { %v84_v21 = vmul.f32 0.03125, %v80_v20 }
 0x14d   :  { %v86_v22 = vadd.f32 1e-05, %v84_v21 }
 0x14e   :  { %v83_v23 = vpop.xlane.xlu1 %82 }
 0x14f   :  { %2252 = vrsqrt.f32 %v86_v22  ;;  %v85_v24 = vmul.f32 0.03125, %v83_v23 }
 0x151   :  { %v87_v25 = vadd.f32 1e-05, %v85_v24 }
 0x153   :  { %2254 = vrsqrt.f32 %v87_v25 }
 0x159   :  { %v2253_v26 = vpop.eup %2252 }
 0x15a   :  { %v90_v28 = vmul.f32 %v2253_v26, %v74_v6 }
 0x15c   :  { %v96_v30 = vmul.f32 %v1957_v27, %v90_v28 }
 0x15d   :  { %v2255_v31 = vpop.eup %2254 }
 0x15e   :  { %v91_v32 = vmul.f32 %v2255_v31, %v75_v10  ;;  %v102_v33 = vadd.f32 %v1958_v29, %v96_v30 }
 0x160   :  { %v97_v34 = vmul.f32 %v1957_v27, %v91_v32  ;;  %2066 = vmatprep.mubr.msk.f32.mxu1 %vm64_vm0, %v102_v33 }
 0x162   :  { %v103_v35 = vadd.f32 %v1958_v29, %v97_v34 }
 0x164   :  { %2067 = vmatmul.mubr.msk.f32.vlgmr.msra.gmra.mrb[0].mxu1 %vm64_vm0, %v103_v35 }
 0x165   :  { %2071 = vmatprep.mubr.msk.f32.mxu1 %vm2378_vm1, %v2377_v39 }
 0x237   :  { %v2068_v46 = vpop.f32.mrb[0].mxu1 }
 0x238   :  { %v2471_v47 = vadd.f32 %v2068_v46, %v1959_v44  ;;  %v184_v48 = vpop.f32.mrb[1].mxu1 }
 0x239   :  { %v2473_v51 = vadd.f32 %v1959_v44, %v184_v48 }
 0x23a   :  { %345 = vrot.lane.b32.xlu1 %v2471_v47, %s2379_s2  ;;  %v239_v63 = vmul.f32 %v221_v55, %v2471_v47  ;;  %v241_v1 = vmul.f32 %v225_v53, %v2471_v47  ;;  %v243_v3 = vmul.f32 %v229_v56, %v2471_v47  ;;  %v245_v4 = vmul.f32 %v233_v58, %v2471_v47 }
 0x23b   :  { %267 = vrot.lane.b32.xlu0 %v2473_v51, %s2379_s2  ;;  %v238_v60 = vmul.f32 %v221_v55, %v2473_v51  ;;  %v240_v61 = vmul.f32 %v225_v53, %v2473_v51  ;;  %v242_v0 = vmul.f32 %v229_v56, %v2473_v51  ;;  %v244_v2 = vmul.f32 %v233_v58, %v2473_v51 }
 0x23e   :  { %248 = vrot.lane.b32.xlu1 %v225_v53, %s2380_s29 }
 0x23f   :  { %246 = vrot.lane.b32.xlu0 %v221_v55, %s2380_s29 }
 0x242   :  { %250 = vrot.lane.b32.xlu1 %v229_v56, %s2380_s29 }
 0x246   :  { %252 = vrot.lane.b32.xlu1 %v233_v58, %s2380_s29 }
 0x2ac   :  { %v346_v62 = vpop.permute.xlu1 %345 }
 0x2ad   :  { %v268_v59 = vpop.permute.xlu0 %267 }
 0x2ae   :  { %2070 = vmatpush3.xpose.msk.msra.mxu1 %vm64_vm0, %v268_v59  ;;  %2080 = vmatpush3.xpose.msk.msra.mxu0 %vm64_vm0, %v268_v59 }
 0x2af   :  { %2074 = vmatprep.subr.mxu1 %v2377_v39  ;;  %2089 = vmatprep.subr.mxu0 %v2377_v39 }
 0x2b0   :  { %v249_v38 = vpop.permute.xlu1 %248 }
 0x2b1   :  { %2072 = vmatmul.mubr.msk.f32.vlgmr.msra.gmra.mrb[2].mxu1 %vm64_vm0, %v238_v60  ;;  %2082 = vmatmul.mubr.msk.f32.vlgmr.msra.gmra.mrb[0].mxu0 %vm64_vm0, %v240_v61  ;;  %v247_v36 = vpop.permute.xlu0 %246  ;;  %v260_v40 = vmul.f32 %v249_v38, %v2473_v51  ;;  %v261_v44 = vmul.f32 %v249_v38, %v2471_v47 }
 0x2b2   :  { %2075 = vmatpush3.xpose.msk.msra.mxu1 %vm64_vm0, %v346_v62  ;;  %2090 = vmatpush3.xpose.msk.msra.mxu0 %vm64_vm0, %v268_v59  ;;  %v259_v37 = vmul.f32 %v247_v36, %v2471_v47  ;;  %v258_v41 = vmul.f32 %v247_v36, %v2473_v51 }
 0x2b3   :  { %2076 = vmatprep.mubr.msk.f32.mxu1 %vm2378_vm1, %v2377_v39  ;;  %2091 = vmatprep.mubr.msk.f32.mxu0 %vm2378_vm1, %v2377_v39 }
 0x2b4   :  { %2084 = vmatprep.subr.mxu1 %v2377_v39  ;;  %2099 = vmatprep.subr.mxu0 %v2377_v39  ;;  %v251_v45 = vpop.permute.xlu1 %250 }
 0x2b5   :  { %2077 = vmatmul.mubr.msk.f32.vlgmr.msra.gmra.mrb[4].mxu1 %vm64_vm0, %v239_v63  ;;  %2092 = vmatmul.mubr.msk.f32.vlgmr.msra.gmra.mrb[2].mxu0 %vm64_vm0, %v242_v0 }
 0x2b6   :  { %2085 = vmatpush3.xpose.msk.msra.mxu1 %vm64_vm0, %v346_v62  ;;  %2100 = vmatpush3.xpose.msk.msra.mxu0 %vm64_vm0, %v268_v59 }
 0x2b7   :  { %2086 = vmatprep.mubr.msk.f32.mxu1 %vm2378_vm1, %v2377_v39  ;;  %2101 = vmatprep.mubr.msk.f32.mxu0 %vm2378_vm1, %v2377_v39 }
 0x2b8   :  { %2094 = vmatprep.subr.mxu1 %v2377_v39  ;;  %2109 = vmatprep.subr.mxu0 %v2377_v39  ;;  %v2554_v46 = vpop.permute.xlu1 %252 }
 0x2b9   :  { %2087 = vmatmul.mubr.msk.f32.vlgmr.msra.gmra.mrb[6].mxu1 %vm64_vm0, %v241_v1  ;;  %2102 = vmatmul.mubr.msk.f32.vlgmr.msra.gmra.mrb[4].mxu0 %vm64_vm0, %v244_v2 }
 0x2ba   :  { %2095 = vmatpush3.xpose.msk.msra.mxu1 %vm64_vm0, %v346_v62  ;;  %2096 = vmatprep.mubr.msk.f32.mxu1 %vm2378_vm1, %v2377_v39 }
 0x2bb   :  { %2104 = vmatprep.subr.mxu1 %v2377_v39  ;;  %2111 = vmatprep.mubr.msk.f32.mxu0 %vm2378_vm1, %v2377_v39 }
 0x2bd   :  { %2097 = vmatmul.mubr.msk.f32.vlgmr.msra.gmra.mrb[8].mxu1 %vm64_vm0, %v243_v3 }
 0x2be   :  { %2105 = vmatpush3.xpose.msk.msra.mxu1 %vm64_vm0, %v346_v62  ;;  %2106 = vmatprep.mubr.msk.f32.mxu1 %vm2378_vm1, %v2377_v39 }
 0x2bf   :  { %2114 = vmatprep.subr.mxu1 %v2377_v39 }
 0x2c1   :  { %2107 = vmatmul.mubr.msk.f32.vlgmr.msra.gmra.mrb[10].mxu1 %vm64_vm0, %v245_v4 }
 0x2c2   :  { %2116 = vmatprep.mubr.msk.f32.mxu1 %vm2378_vm1, %v2377_v39 }
 0x384   :  { %v340_v6 = vpop.f32.mrb[2].mxu1  ;;  %v491_v7 = vpop.f32.mrb[0].mxu0 }
 0x385   :  { %v341_v8 = vadd.f32 %v340_v6, %v62_v5  ;;  %v492_v9 = vadd.f32 %v491_v7, %v62_v5  ;;  %v2073_v10 = vpop.f32.mrb[3].mxu1  ;;  %v2083_v11 = vpop.f32.mrb[1].mxu0 }
 0x387   :  { %v867_v12 = vsel %vm860_vm2, %v492_v9, -inf  ;;  %v861_v13 = vsel %vm860_vm2, %v341_v8, -inf }
 0x388   :  { %868 = vmax.xlane.f32.xlu0 %v867_v12  ;;  %v637_v14 = vpop.f32.mrb[2].mxu0  ;;  %862 = vmax.xlane.f32.xlu1 %v861_v13  ;;  %v418_v15 = vpop.f32.mrb[4].mxu1  ;;  %v263_v13 = vmul.f32 %v251_v45, %v2471_v47 }
 0x389   :  { %v419_v16 = vadd.f32 %v418_v15, %v62_v5  ;;  %v2078_v17 = vpop.f32.mrb[5].mxu1  ;;  %v2093_v18 = vpop.f32.mrb[3].mxu0  ;;  %v638_v19 = vadd.f32 %v637_v14, %v62_v5  ;;  %v262_v14 = vmul.f32 %v251_v45, %v2473_v51 }
 0x38b   :  { %v864_v20 = vsel %vm860_vm2, %v419_v16, -inf  ;;  %v873_v27 = vsel %vm860_vm2, %v638_v19, -inf }
 0x38c   :  { %v783_v21 = vpop.f32.mrb[4].mxu0  ;;  %865 = vmax.xlane.f32.xlu0 %v864_v20  ;;  %v564_v22 = vpop.f32.mrb[6].mxu1 }
 0x38d   :  { %v565_v23 = vadd.f32 %v564_v22, %v62_v5  ;;  %v2088_v24 = vpop.f32.mrb[7].mxu1  ;;  %v2103_v25 = vpop.f32.mrb[5].mxu0  ;;  %v2532_v26 = vadd.f32 %v783_v21, %v62_v5 }
 0x38f   :  { %v870_v28 = vsel %vm860_vm2, %v565_v23, -inf  ;;  %v879_v32 = vsel %vm860_vm2, %v2532_v26, -inf }
 0x390   :  { %874 = vmax.xlane.f32.xlu0 %v873_v27  ;;  %871 = vmax.xlane.f32.xlu1 %v870_v28  ;;  %v710_v29 = vpop.f32.mrb[8].mxu1 }
 0x391   :  { %v2536_v30 = vadd.f32 %v710_v29, %v62_v5  ;;  %v2098_v31 = vpop.f32.mrb[9].mxu1 }
 0x392   :  { %v264_v31 = vmul.f32 %v2554_v46, %v2473_v51 }
 0x393   :  { %v876_v42 = vsel %vm860_vm2, %v2536_v30, -inf }
 0x394   :  { %880 = vmax.xlane.f32.xlu0 %v879_v32  ;;  %v856_v33 = vpop.f32.mrb[10].mxu1 }
 0x395   :  { %v2540_v34 = vadd.f32 %v856_v33, %v62_v5  ;;  %v2108_v35 = vpop.f32.mrb[11].mxu1 }
 0x397   :  { %v882_v43 = vsel %vm860_vm2, %v2540_v34, -inf }
 0x3a1   :  { %1027 = vrot.lane.b32.xlu1 %v259_v37, %s2380_s29 }
 0x3a5   :  { %1104 = vrot.lane.b32.xlu1 %v260_v40, %s2380_s29 }
 0x3aa   :  { %950 = vrot.lane.b32.xlu0 %v258_v41, %s2380_s29 }
 0x3c9   :  { %877 = vmax.xlane.f32.xlu1 %v876_v42 }
 0x3cd   :  { %883 = vmax.xlane.f32.xlu1 %v882_v43 }
 0x3de   :  { %1181 = vrot.lane.b32.xlu1 %v261_v44, %s2380_s29 }
 0x415   :  { %v869_v48 = vpop.xlane.xlu0 %868  ;;  %v863_v49 = vpop.xlane.xlu1 %862 }
 0x416   :  { %v887_v50 = vsub.f32 %v492_v9, %v869_v48  ;;  %v885_v52 = vsub.f32 %v341_v8, %v863_v49 }
 0x418   :  { %v893_v53 = vmul.f32 1.442695, %v885_v52  ;;  %v897_v54 = vmul.f32 1.442695, %v887_v50 }
 0x419   :  { %v866_v55 = vpop.xlane.xlu0 %865 }
 0x41a   :  { %v886_v56 = vsub.f32 %v419_v16, %v866_v55  ;;  %2256 = vpow2.f32 %v893_v53 }
 0x41b   :  { %2258 = vpow2.f32 %v897_v54 }
 0x41c   :  { %v895_v57 = vmul.f32 1.442695, %v886_v56 }
 0x41d   :  { %v875_v58 = vpop.xlane.xlu0 %874  ;;  %v872_v59 = vpop.xlane.xlu1 %871 }
 0x41e   :  { %2260 = vpow2.f32 %v895_v57  ;;  %v889_v60 = vsub.f32 %v638_v19, %v875_v58  ;;  %v888_v61 = vsub.f32 %v565_v23, %v872_v59 }
 0x420   :  { %v901_v62 = vmul.f32 1.442695, %v889_v60  ;;  %v899_v63 = vmul.f32 1.442695, %v888_v61 }
 0x421   :  { %v881_v0 = vpop.xlane.xlu0 %880  ;;  %v1028_v1 = vpop.permute.xlu1 %1027 }
 0x422   :  { %2262 = vpow2.f32 %v901_v62  ;;  %2115 = vmatpush3.msra.mxu1 %v1028_v1  ;;  %v891_v15 = vsub.f32 %v2532_v26, %v881_v0  ;;  %v1571_v62 = vld [vmem:[%s2713_s3] sm:$0xff]  ;;  %v1573_v1 = vld [vmem:[%s2713_s3 + $0x10] sm:$0xff] }
 0x423   :  { %2124 = vmatprep.subr.mxu1 %v2377_v39  ;;  %2264 = vpow2.f32 %v899_v63  ;;  %v1572_v63 = vld [vmem:[%s2713_s3 + $0x8] sm:$0xff] }
 0x424   :  { %v2257_v2 = vpop.eup %2256  ;;  %v905_v17 = vmul.f32 1.442695, %v891_v15  ;;  %v2198_v0 = vpack.c.bf16 %v1572_v63, %v1571_v62 }
 0x425   :  { %v951_v3 = vpop.permute.xlu0 %950  ;;  %v909_v4 = vsel %vm860_vm2, %v2257_v2, 0.0  ;;  %v2558_v5 = vpop.eup %2258 }
 0x426   :  { %2110 = vmatpush3.msra.mxu0 %v951_v3  ;;  %910 = vadd.xlane.f32.xlu0 %v909_v4  ;;  %v915_v8 = vsel %vm860_vm2, %v2558_v5, 0.0  ;;  %v1105_v16 = vpop.permute.xlu1 %1104  ;;  %2266 = vpow2.f32 %v905_v17 }
 0x427   :  { %2119 = vmatprep.subr.mxu0 %v2377_v39 }
 0x428   :  { %v2261_v6 = vpop.eup %2260 }
 0x429   :  { %v912_v7 = vsel %vm860_vm2, %v2261_v6, 0.0 }
 0x42a   :  { %913 = vadd.xlane.f32.xlu1 %v912_v7  ;;  %916 = vadd.xlane.f32.xlu0 %v915_v8  ;;  %v1987_v7 = vld [vmem:[#allocation5 + $0x2] ss:$0 sm:$0xff] }
 0x42c   :  { %v2564_v9 = vpop.eup %2262 }
 0x42d   :  { %v921_v10 = vsel %vm860_vm2, %v2564_v9, 0.0  ;;  %v2568_v11 = vpop.eup %2264 }
 0x42e   :  { %922 = vadd.xlane.f32.xlu0 %v921_v10  ;;  %v918_v12 = vsel %vm860_vm2, %v2568_v11, 0.0 }
 0x430   :  { %v2579_v24 = vpop.eup %2266 }
 0x431   :  { %v927_v27 = vsel %vm860_vm2, %v2579_v24, 0.0 }
 0x432   :  { %919 = vadd.xlane.f32.xlu0 %v918_v12 }
 0x43b   :  { %1335 = vrot.lane.b32.xlu1 %v263_v13, %s2380_s29 }
 0x448   :  { %1258 = vrot.lane.b32.xlu0 %v262_v14, %s2380_s29 }
 0x456   :  { %v878_v18 = vpop.xlane.xlu1 %877 }
 0x457   :  { %v890_v19 = vsub.f32 %v2536_v30, %v878_v18  ;;  %v265_v30 = vmul.f32 %v2554_v46, %v2471_v47 }
 0x459   :  { %v903_v20 = vmul.f32 1.442695, %v890_v19 }
 0x45a   :  { %v884_v21 = vpop.xlane.xlu1 %883 }
 0x45b   :  { %2268 = vpow2.f32 %v903_v20  ;;  %v892_v22 = vsub.f32 %v2540_v34, %v884_v21 }
 0x45d   :  { %v907_v23 = vmul.f32 1.442695, %v892_v22 }
 0x45e   :  { %v1182_v32 = vpop.permute.xlu1 %1181 }
 0x45f   :  { %2270 = vpow2.f32 %v907_v23 }
 0x465   :  { %v2581_v25 = vpop.eup %2268 }
 0x466   :  { %v924_v26 = vsel %vm860_vm2, %v2581_v25, 0.0 }
 0x467   :  { %925 = vadd.xlane.f32.xlu1 %v924_v26  ;;  %928 = vadd.xlane.f32.xlu0 %v927_v27  ;;  %v1700_v27 = vld [vmem:[%s2714_s4 + $0x10] sm:$0xff] }
 0x469   :  { %v2587_v28 = vpop.eup %2270 }
 0x46a   :  { %v930_v29 = vsel %vm860_vm2, %v2587_v28, 0.0 }
 0x46b   :  { %931 = vadd.xlane.f32.xlu1 %v930_v29 }
 0x47c   :  { %1489 = vrot.lane.b32.xlu1 %v265_v30, %s2380_s29 }
 0x47d   :  { %1412 = vrot.lane.b32.xlu0 %v264_v31, %s2380_s29 }
 0x4b3   :  { %v911_v33 = vpop.xlane.xlu0 %910 }
 0x4b4   :  { %2272 = vrcp.f32 %v911_v33 }
 0x4b7   :  { %v914_v34 = vpop.xlane.xlu1 %913  ;;  %v917_v35 = vpop.xlane.xlu0 %916 }
 0x4b8   :  { %2274 = vrcp.f32 %v914_v34 }
 0x4b9   :  { %2276 = vrcp.f32 %v917_v35 }
 0x4bb   :  { %v923_v36 = vpop.xlane.xlu0 %922  ;;  %v1336_v48 = vpop.permute.xlu1 %1335 }
 0x4be   :  { %v2273_v37 = vpop.eup %2272 }
 0x4bf   :  { %v941_v38 = vmul.f32 %v2273_v37, %v2257_v2  ;;  %v920_v40 = vpop.xlane.xlu0 %919  ;;  %v1990_v37 = vld [vmem:[#allocation5 + $0x3] ss:$0 sm:$0xff] }
 0x4c0   :  { %2278 = vrcp.f32 %v920_v40  ;;  %v1991_v40 = vld [vmem:[#allocation5 + $0x4] ss:$0 sm:$0xff] }
 0x4c1   :  { %2112 = vmatmul.mubr.msk.f32.vlgmr.msra.gmra.mrb[6].mxu0 %vm860_vm2, %v941_v38  ;;  %2280 = vrcp.f32 %v923_v36 }
 0x4c2   :  { %v2275_v47 = vpop.eup %2274  ;;  %2120 = vmatpush3.msra.mxu0 %v1105_v16  ;;  %2121 = vmatprep.mubr.msk.f32.mxu0 %vm2378_vm1, %v2377_v39 }
 0x4c3   :  { %v942_v51 = vmul.f32 %v2275_v47, %v2261_v6  ;;  %2129 = vmatprep.subr.mxu0 %v2377_v39  ;;  %v2277_v41 = vpop.eup %2276  ;;  %v1259_v43 = vpop.permute.xlu0 %1258 }
 0x4c4   :  { %v943_v42 = vmul.f32 %v2277_v41, %v2558_v5 }
 0x4c5   :  { %2117 = vmatmul.mubr.msk.f32.vlgmr.msra.gmra.mrb[12].mxu1 %vm860_vm2, %v942_v51 }
 0x4c6   :  { %2125 = vmatpush3.msra.mxu1 %v1182_v32  ;;  %2126 = vmatprep.mubr.msk.f32.mxu1 %vm2378_vm1, %v2377_v39 }
 0x4c7   :  { %2134 = vmatprep.subr.mxu1 %v2377_v39 }
 0x4c9   :  { %2122 = vmatmul.mubr.msk.f32.vlgmr.msra.gmra.mrb[6].mxu0 %vm860_vm2, %v943_v42 }
 0x4ca   :  { %v2279_v44 = vpop.eup %2278  ;;  %2130 = vmatpush3.msra.mxu0 %v1259_v43  ;;  %2131 = vmatprep.mubr.msk.f32.mxu0 %vm2378_vm1, %v2377_v39 }
 0x4cb   :  { %v944_v45 = vmul.f32 %v2279_v44, %v2568_v11  ;;  %2139 = vmatprep.subr.mxu0 %v2377_v39  ;;  %v2281_v46 = vpop.eup %2280 }
 0x4cc   :  { %v945_v49 = vmul.f32 %v2281_v46, %v2564_v9  ;;  %v1842_v46 = vld [vmem:[%s2715_s5 + $0x8] sm:$0xff] }
 0x4cd   :  { %2127 = vmatmul.mubr.msk.f32.vlgmr.msra.gmra.mrb[12].mxu1 %vm860_vm2, %v944_v45  ;;  %v1841_v45 = vld [vmem:[%s2715_s5] sm:$0xff] }
 0x4ce   :  { %2135 = vmatpush3.msra.mxu1 %v1336_v48  ;;  %2136 = vmatprep.mubr.msk.f32.mxu1 %vm2378_vm1, %v2377_v39  ;;  %v2214_v48 = vpack.c.bf16 %v1842_v46, %v1841_v45 }
 0x4cf   :  { %2144 = vmatprep.subr.mxu1 %v2377_v39 }
 0x4d1   :  { %2132 = vmatmul.mubr.msk.f32.vlgmr.msra.gmra.mrb[6].mxu0 %vm860_vm2, %v945_v49  ;;  %v1843_v49 = vld [vmem:[%s2715_s5 + $0x10] sm:$0xff] }
 0x4d2   :  { %2141 = vmatprep.mubr.msk.f32.mxu0 %vm2378_vm1, %v2377_v39 }
 0x4f4   :  { %v926_v50 = vpop.xlane.xlu1 %925  ;;  %v929_v52 = vpop.xlane.xlu0 %928 }
 0x4f5   :  { %2282 = vrcp.f32 %v926_v50  ;;  %v1844_v50 = vld [vmem:[%s2715_s5 + $0x18] sm:$0xff] }
 0x4f6   :  { %2284 = vrcp.f32 %v929_v52  ;;  %v2218_v52 = vpack.c.bf16 %v1844_v50, %v1843_v49 }
 0x4f8   :  { %v932_v53 = vpop.xlane.xlu1 %931  ;;  %v1413_v54 = vpop.permute.xlu0 %1412 }
 0x4f9   :  { %2140 = vmatpush3.msra.mxu0 %v1413_v54  ;;  %2286 = vrcp.f32 %v932_v53  ;;  %v1845_v53 = vld [vmem:[%s2715_s5 + $0x20] sm:$0xff]  ;;  %v1846_v54 = vld [vmem:[%s2715_s5 + $0x28] sm:$0xff] }
 0x4fa   :  { %2199 = vmatprep.subr.bf16.mxu0 %v2198_v0 }
 0x4fc   :  { %v1490_v59 = vpop.permute.xlu1 %1489 }
 0x4ff   :  { %v2283_v55 = vpop.eup %2282 }
 0x500   :  { %v2285_v56 = vpop.eup %2284  ;;  %v946_v57 = vmul.f32 %v2283_v55, %v2581_v25  ;;  %v1699_v25 = vld [vmem:[%s2714_s4 + $0x8] sm:$0xff]  ;;  %v2222_v55 = vpack.c.bf16 %v1846_v54, %v1845_v53 }
 0x501   :  { %v947_v58 = vmul.f32 %v2285_v56, %v2579_v24  ;;  %v1698_v24 = vld [vmem:[%s2714_s4] sm:$0xff]  ;;  %v1847_v56 = vld [vmem:[%s2715_s5 + $0x30] sm:$0xff] }
 0x502   :  { %2137 = vmatmul.mubr.msk.f32.vlgmr.msra.gmra.mrb[12].mxu1 %vm860_vm2, %v946_v57  ;;  %v2206_v26 = vpack.c.bf16 %v1699_v25, %v1698_v24  ;;  %v1848_v57 = vld [vmem:[%s2715_s5 + $0x38] sm:$0xff]  ;;  %s2381_s5 = smov [#allocation7]  }
 0x503   :  { %2142 = vmatmul.mubr.msk.f32.vlgmr.msra.gmra.mrb[6].mxu0 %vm860_vm2, %v947_v58  ;;  %2145 = vmatpush3.msra.mxu1 %v1490_v59  ;;  %v2287_v60 = vpop.eup %2286  ;;  %v2226_v58 = vpack.c.bf16 %v1848_v57, %v1847_v56  ;;  %v1992_v59 = vld [vmem:[#allocation5 + $0x7] ss:$0 sm:$0xff]  ;;  %s1944_s13 = sshll.u32 %s2381_s5, 4  ;;  %s1945_s13 = int_to_ptr.vmem [resolvable:$true] %s1944_s13 }
 0x504   :  { %2146 = vmatprep.mubr.msk.f32.mxu1 %vm2378_vm1, %v2377_v39  ;;  %v948_v61 = vmul.f32 %v2287_v60, %v2587_v28  ;;  %v1574_v39 = vld [vmem:[%s2713_s3 + $0x18] sm:$0xff]  ;;  %2201 = vmatpush3.bf16.msra.mxu0 %v2198_v0  ;;  %s2344_s14 = scalar_lea.vmem %s1945_s13, 256  ;;  %p2349_p3 = scmp.lt.s32.totalorder %s1945_s13, %s1945_s13 }
 0x505   :  { %v2202_v2 = vpack.c.bf16 %v1574_v39, %v1573_v1  ;;  %2207 = vmatprep.subr.bf16.mxu1 %v2206_v26  ;;  %v1701_v28 = vld [vmem:[%s2714_s4 + $0x18] sm:$0xff]  ;;  %p2345_p2 = scmp.ne.s32.totalorder %s1945_s13, %s2344_s14  ;;  %p2350_p4 = scmp.lt.s32.totalorder %s2344_s14, %s2344_s14 }
 0x506   :  { %v2210_v29 = vpack.c.bf16 %v1701_v28, %v1700_v27 }
 0x507   :  { %2203 = vmatprep.subr.bf16.mxu0 %v2202_v2  ;;  %p2351_p5 = por %p2350_p4, %p2349_p3 }
 0x508   :  { %2205 = vmatpush3.bf16.msra.mxu0 %v2202_v2 }
 0x509   :  { %2215 = vmatprep.subr.bf16.mxu0 %v2214_v48  ;;  %p2352_p6 = pnand %p2351_p5, %p2345_p2 }
 0x50a   :  { %2147 = vmatmul.mubr.msk.f32.vlgmr.msra.gmra.mrb[12].mxu1 %vm860_vm2, %v948_v61 }
 0x50b   :  { %2209 = vmatpush3.bf16.msra.mxu1 %v2206_v26 }
 0x50c   :  { %2211 = vmatprep.subr.bf16.mxu1 %v2210_v29 }
 0x50f   :  { %2213 = vmatpush3.bf16.msra.mxu1 %v2210_v29 }
 0x5d6   :  { %v1484_v3 = vpop.f32.mrb[6].mxu0 }
 0x5d7   :  { %v2143_v4 = vpop.f32.mrb[7].mxu0  ;;  %2157 = vmatprep.mubr.msk.f32.mxu0 %vm64_vm0, %v1484_v3 }
 0x5dd   :  { %v1561_v5 = vpop.f32.mrb[12].mxu1 }
 0x5de   :  { %v2148_v6 = vpop.f32.mrb[13].mxu1  ;;  %2158 = vmatmul.mubr.msk.f32.vlgmr.msra.gmra.mrb[8].mxu0 %vm64_vm0, %v1561_v5 }
 0x5df   :  { %2217 = vmatpush3.bf16.msra.mxu0 %v2214_v48 }
 0x5e0   :  { %2219 = vmatprep.subr.bf16.mxu0 %v2218_v52 }
 0x5e3   :  { %2221 = vmatpush3.bf16.msra.mxu0 %v2218_v52  ;;  %v1995_v52 = vld [vmem:[#allocation5 + $0x5] ss:$0 sm:$0xff] }
 0x5e4   :  { %2223 = vmatprep.subr.bf16.mxu0 %v2222_v55 }
 0x5e7   :  { %2225 = vmatpush3.bf16.msra.mxu0 %v2222_v55 }
 0x5e8   :  { %2227 = vmatprep.subr.bf16.mxu0 %v2226_v58 }
 0x5eb   :  { %2229 = vmatpush3.bf16.msra.mxu0 %v2226_v58 }
 0x6b1   :  { %v2159_v8 = vpop.f32.mrb[8].mxu0 }
 0x6b2   :  { %v2641_v9 = vadd.f32 %v2159_v8, %v1987_v7  ;;  %v1651_v10 = vpop.f32.mrb[9].mxu0 }
 0x6b3   :  { %v2643_v11 = vadd.f32 %v1987_v7, %v1651_v10 }
 0x6b4   :  { %v1663_v12 = vsel %vm64_vm0, %v2641_v9, 0.0 }
 0x6b5   :  { %1664 = vadd.xlane.f32.xlu1 %v1663_v12  ;;  %v1660_v13 = vsel %vm64_vm0, %v2643_v11, 0.0 }
 0x6b6   :  { %1661 = vadd.xlane.f32.xlu0 %v1660_v13 }
 0x742   :  { %v1665_v14 = vpop.xlane.xlu1 %1664 }
 0x743   :  { %v1667_v15 = vmul.f32 0.03125, %v1665_v14  ;;  %v1662_v16 = vpop.xlane.xlu0 %1661 }
 0x744   :  { %v1666_v17 = vmul.f32 0.03125, %v1662_v16 }
 0x745   :  { %v1669_v18 = vsub.f32 %v2641_v9, %v1667_v15 }
 0x746   :  { %v1668_v19 = vsub.f32 %v2643_v11, %v1666_v17 }
 0x747   :  { %v1671_v22 = vmul.f32 %v1669_v18, %v1669_v18 }
 0x748   :  { %v1670_v20 = vmul.f32 %v1668_v19, %v1668_v19 }
 0x749   :  { %v1675_v23 = vsel %vm64_vm0, %v1671_v22, 0.0 }
 0x74a   :  { %v1672_v21 = vsel %vm64_vm0, %v1670_v20, 0.0 }
 0x74b   :  { %1673 = vadd.xlane.f32.xlu0 %v1672_v21 }
 0x74f   :  { %1676 = vadd.xlane.f32.xlu0 %v1675_v23 }
 0x7d8   :  { %v1674_v30 = vpop.xlane.xlu0 %1673 }
 0x7d9   :  { %v1678_v31 = vmul.f32 0.03125, %v1674_v30 }
 0x7db   :  { %v1680_v32 = vadd.f32 1e-05, %v1678_v31 }
 0x7dc   :  { %v1677_v33 = vpop.xlane.xlu0 %1676 }
 0x7dd   :  { %2288 = vrsqrt.f32 %v1680_v32  ;;  %v1679_v34 = vmul.f32 0.03125, %v1677_v33 }
 0x7df   :  { %v1681_v35 = vadd.f32 1e-05, %v1679_v34 }
 0x7e1   :  { %2290 = vrsqrt.f32 %v1681_v35 }
 0x7e7   :  { %v2289_v36 = vpop.eup %2288 }
 0x7e8   :  { %v1684_v38 = vmul.f32 %v2289_v36, %v1668_v19 }
 0x7ea   :  { %v1690_v47 = vmul.f32 %v1990_v37, %v1684_v38 }
 0x7eb   :  { %v2291_v51 = vpop.eup %2290 }
 0x7ec   :  { %v1685_v41 = vmul.f32 %v2291_v51, %v1669_v18  ;;  %v1696_v42 = vadd.f32 %v1991_v40, %v1690_v47 }
 0x7ee   :  { %v1691_v43 = vmul.f32 %v1990_v37, %v1685_v41  ;;  %2168 = vmatprep.mubr.msk.f32.mxu1 %vm64_vm0, %v1696_v42 }
 0x7f0   :  { %v1697_v44 = vadd.f32 %v1991_v40, %v1691_v43 }
 0x7f2   :  { %2169 = vmatmul.mubr.msk.f32.vlgmr.msra.gmra.mrb[14].mxu1 %vm64_vm0, %v1697_v44 }
 0x8c5   :  { %v2170_v60 = vpop.f32.mrb[14].mxu1 }
 0x8c6   :  { %v1784_v61 = vadd.f32 %v2170_v60, %v1992_v59  ;;  %v1778_v62 = vpop.f32.mrb[15].mxu1 }
 0x8c7   :  { %v1779_v63 = vadd.f32 %v1992_v59, %v1778_v62 }
 0x8c8   :  { %v1790_v0 = vmul.f32 0.70710677, %v1784_v61  ;;  %v1788_v48 = vmul.f32 0.5, %v1784_v61 }
 0x8c9   :  { %v1789_v1 = vmul.f32 0.70710677, %v1779_v63  ;;  %v1787_v45 = vmul.f32 0.5, %v1779_v63 }
 0x8ca   :  { %v1792_v39 = vand.u32 2147483647, %v1790_v0  ;;  %vm1832_vm3 = vcmp.ge.f32.partialorder %v1790_v0, 0.0 }
 0x8cb   :  { %v1791_v2 = vand.u32 2147483647, %v1789_v1  ;;  %vm1831_vm4 = vcmp.ge.f32.partialorder %v1789_v1, 0.0 }
 0x8cc   :  { %v1794_v3 = vmul.f32 0.3275911, %v1792_v39  ;;  %v1820_v7 = vmul.f32 %v1792_v39, %v1792_v39 }
 0x8cd   :  { %v1793_v4 = vmul.f32 0.3275911, %v1791_v2  ;;  %v1819_v8 = vmul.f32 %v1791_v2, %v1791_v2 }
 0x8ce   :  { %v1796_v5 = vadd.f32 1.0, %v1794_v3  ;;  %v1822_v12 = vsub.f32 0.0, %v1820_v7 }
 0x8cf   :  { %v1795_v6 = vadd.f32 1.0, %v1793_v4  ;;  %v1821_v15 = vsub.f32 0.0, %v1819_v8 }
 0x8d0   :  { %2292 = vrcp.f32 %v1796_v5  ;;  %v1825_v18 = vmul.f32 1.442695, %v1822_v12 }
 0x8d1   :  { %2294 = vrcp.f32 %v1795_v6  ;;  %v1823_v21 = vmul.f32 1.442695, %v1821_v15 }
 0x8d2   :  { %2296 = vpow2.f32 %v1825_v18 }
 0x8d3   :  { %2298 = vpow2.f32 %v1823_v21 }
 0x8da   :  { %v2293_v10 = vpop.eup %2292 }
 0x8db   :  { %v2295_v13 = vpop.eup %2294  ;;  %v1802_v14 = vmul.f32 1.0614054, %v2293_v10 }
 0x8dc   :  { %v1801_v16 = vmul.f32 1.0614054, %v2295_v13  ;;  %v2297_v34 = vpop.eup %2296 }
 0x8dd   :  { %v1804_v17 = vadd.f32 -1.4531521, %v1802_v14  ;;  %v2299_v36 = vpop.eup %2298 }
 0x8de   :  { %v1803_v19 = vadd.f32 -1.4531521, %v1801_v16 }
 0x8df   :  { %v1806_v20 = vmul.f32 %v2293_v10, %v1804_v17 }
 0x8e0   :  { %v1805_v22 = vmul.f32 %v2295_v13, %v1803_v19 }
 0x8e1   :  { %v1808_v23 = vadd.f32 1.4214138, %v1806_v20 }
 0x8e2   :  { %v1807_v24 = vadd.f32 1.4214138, %v1805_v22 }
 0x8e3   :  { %v1810_v25 = vmul.f32 %v2293_v10, %v1808_v23 }
 0x8e4   :  { %v1809_v26 = vmul.f32 %v2295_v13, %v1807_v24 }
 0x8e5   :  { %v1812_v27 = vadd.f32 -0.28449672, %v1810_v25 }
 0x8e6   :  { %v1811_v28 = vadd.f32 -0.28449672, %v1809_v26 }
 0x8e7   :  { %v1814_v29 = vmul.f32 %v2293_v10, %v1812_v27 }
 0x8e8   :  { %v1813_v30 = vmul.f32 %v2295_v13, %v1811_v28 }
 0x8e9   :  { %v1816_v31 = vadd.f32 0.2548296, %v1814_v29 }
 0x8ea   :  { %v1815_v32 = vadd.f32 0.2548296, %v1813_v30 }
 0x8eb   :  { %v1818_v33 = vmul.f32 %v2293_v10, %v1816_v31 }
 0x8ec   :  { %v1817_v35 = vmul.f32 %v2295_v13, %v1815_v32 }
 0x8ed   :  { %v1828_v37 = vmul.f32 %v2297_v34, %v1818_v33 }
 0x8ee   :  { %v1827_v38 = vmul.f32 %v2299_v36, %v1817_v35 }
 0x8ef   :  { %v1830_v40 = vsub.f32 1.0, %v1828_v37 }
 0x8f0   :  { %v1829_v47 = vsub.f32 1.0, %v1827_v38 }
 0x8f1   :  { %v1834_v51 = vsub.f32 0.0, %v1830_v40 }
 0x8f2   :  { %v1833_v41 = vsub.f32 0.0, %v1829_v47 }
 0x8f3   :  { %v1836_v42 = vsel %vm1832_vm3, %v1830_v40, %v1834_v51 }
 0x8f4   :  { %v1838_v43 = vadd.f32 1.0, %v1836_v42  ;;  %v1835_v44 = vsel %vm1831_vm4, %v1829_v47, %v1833_v41 }
 0x8f5   :  { %v1837_v46 = vadd.f32 1.0, %v1835_v44 }
 0x8f6   :  { %v1840_v50 = vmul.f32 %v1838_v43, %v1788_v48 }
 0x8f7   :  { %v1839_v49 = vmul.f32 %v1837_v46, %v1787_v45 }
 0x8f9   :  { %2187 = vmatprep.mubr.msk.f32.mxu0 %vm1853_vm5, %v1839_v49 }
 0x8fa   :  { %2188 = vmatmul.mubr.msk.f32.vlgmr.msra.gmra.mrb[10].mxu0 %vm1853_vm5, %v1840_v50 }
 0x9cd   :  { %v2189_v53 = vpop.f32.mrb[10].mxu0 }
 0x9ce   :  { %v1932_v54 = vadd.f32 %v2189_v53, %v1995_v52  ;;  %v1926_v55 = vpop.f32.mrb[11].mxu0 }
 0x9cf   :  { %v1927_v56 = vadd.f32 %v1995_v52, %v1926_v55 }
 0x9d0   :  { %v1936_v57 = vadd.f32 %v1932_v54, %v2641_v9 }
 0x9d1   :  { %v1935_v58 = vadd.f32 %v1927_v56, %v2643_v11 }
 0x9d2   :  { %1938 = vst.msk [vmem:[#allocation7 + $0x8] sm:$0xff] %vm64_vm0, %v1936_v57 }
 0x9d3   :  { %1937 = vst.msk [vmem:[#allocation7] sm:$0xff] %vm64_vm0, %v1935_v58 }
 0x9d4   :  { %2355 = shalt.err (!%p2352_p6)
}
 0x9d5   :  { %s2356_s16 = scalar_lea.hbm %s2716_s6, 256 }
 0x9d6   :  { %p2357_p7 = scmp.ne.s32.totalorder %s2716_s6, %s2356_s16  ;;  %p2360_p8 = scmp.lt.u32.totalorder %s2356_s16, %s2716_s6 }
 0x9d8   :  { %p2362_p9 = pnand %p2360_p8, %p2357_p7 }
 0x9da   :  { %2365 = shalt.err (!%p2362_p9)
}
 0x9db   :  { %1950 = dma.vmem_to_hbm [thread:$0]  %s1945_s13, 256, %s2716_s6, [#allocation4], %s2373_s7, %s2373_s7, %s2374_s8  }
 0x9dc   :  { %2370 = dma.done.wait [#allocation4], 256  }
 0x9dd   :  { %2371 = vsyncadd [#allocation4], 4294967040 }
 0x9de   :  { %1954 = vsyncpa [#allocation3], 1 }
 0x9df   :  { %1955 = vsyncpa [#allocation6], 1 }
 0x9e0   :  { %1956 = vsyncpa [#allocation4], 1 }

</bundles_post_ra>
